<compile_context>
chip_gen: v7x
topology: tpu7x:2x2x1
jax: 0.10.0
libtpu: 0.0.40
codegen_flags: <defaults>
</compile_context>

<pallas_src>
import functools

import jax
import jax.numpy as jnp
from jax.experimental import pallas as pl
from jax.experimental.pallas import tpu as pltpu

BN_EPS = 1e-5  # nn.BatchNorm2d default eps


def _round_up(x, m):
    return (x + m - 1) // m * m


def _conv_block_kernel(x_ref, m_ref,
                       w1_ref, b1_ref, g1_ref, be1_ref,
                       w2_ref, b2_ref, g2_ref, be2_ref,
                       o_ref, *, shifts, inv_n):
    mask = m_ref[...]                                   # (1, N): 1.0 at real pixels

    def conv3x3(inp, w_ref, b_ref):
        # Stack the 9 spatially shifted copies along channels (sublanes) and do
        # a single MXU matmul per conv.
        taps = jnp.concatenate(
            [inp if s == 0 else pltpu.roll(inp, s, 1) for s in shifts], axis=0)
        return jnp.dot(w_ref[...], taps,
                       preferred_element_type=jnp.float32) + b_ref[...]

    def bn_relu(h, g_ref, be_ref):
        # Training-mode BatchNorm2d: per-channel stats over the B*H*W valid
        # pixels, biased variance, one-pass sum / sum-of-squares.
        hm = h * mask
        s1 = jnp.sum(hm, axis=1, keepdims=True)
        s2 = jnp.sum(hm * hm, axis=1, keepdims=True)
        mu = s1 * inv_n
        var = s2 * inv_n - mu * mu
        y = (hm - mu) * jax.lax.rsqrt(var + BN_EPS) * g_ref[...] + be_ref[...]
        # Re-mask so the zero-padding ring stays exactly zero for the next conv.
        return jnp.maximum(y, 0.0) * mask

    x = x_ref[...]                                      # (Cip, N)
    y1 = bn_relu(conv3x3(x, w1_ref, b1_ref), g1_ref, be1_ref)
    y2 = bn_relu(conv3x3(y1, w2_ref, b2_ref), g2_ref, be2_ref)
    # TODO(synk): Dropout2d(0.2) -> identity (inference semantics).
    o_ref[...] = y2


def conv_block_forward(x, params):
    B, C_in, H, W = x.shape
    C_out = params["w1"].shape[0]

    Hp, Wp = H + 2, W + 2            # 1-pixel zero ring = conv padding
    Lp = Hp * Wp                     # flat padded pixels per sample
    Nv = B * Lp                      # valid extent of the flat lane axis
    N = _round_up(Nv, 128)           # lane-dense padded extent
    Cip = _round_up(C_in, 8)         # sublane-aligned channel counts
    Cop = _round_up(C_out, 8)
    f32 = jnp.float32

    # ---- pack input: channels on sublanes, flattened padded spatial on lanes ----
    xp = jnp.pad(x.astype(f32), ((0, 0), (0, Cip - C_in), (1, 1), (1, 1)))
    xflat = jnp.transpose(xp, (1, 0, 2, 3)).reshape(Cip, Nv)
    xflat = jnp.pad(xflat, ((0, 0), (0, N - Nv)))

    mask = jnp.pad(jnp.ones((B, H, W), f32), ((0, 0), (1, 1), (1, 1)))
    mask = jnp.pad(mask.reshape(1, Nv), ((0, 0), (0, N - Nv)))

    # ---- pack weights: (C_out, C_in, 3, 3) -> (Cop, 9*Cip), tap-major columns ----
    def conv_w(w, ci_pad, co_pad):
        w = jnp.pad(w.astype(f32), ((0, co_pad), (0, ci_pad), (0, 0), (0, 0)))
        return jnp.transpose(w, (0, 2, 3, 1)).reshape(w.shape[0], -1)

    def col(v, pad, fill=0.0):
        return jnp.pad(v.astype(f32), (0, pad), constant_values=fill).reshape(-1, 1)

    w1m = conv_w(params["w1"], Cip - C_in, Cop - C_out)
    w2m = conv_w(params["w2"], Cop - C_out, Cop - C_out)
    b1c = col(params["b1"], Cop - C_out)
    b2c = col(params["b2"], Cop - C_out)
    g1c = col(params["bn1_gamma"], Cop - C_out, 1.0)
    g2c = col(params["bn2_gamma"], Cop - C_out, 1.0)
    be1c = col(params["bn1_beta"], Cop - C_out)
    be2c = col(params["bn2_beta"], Cop - C_out)

    # Flat-index offsets of the 9 taps; pltpu.roll(shift=s) gives
    # rolled[n] = x[n + off] with s = (-off) mod N.
    shifts = tuple(int((-((dy - 1) * Wp + (dx - 1))) % N)
                   for dy in range(3) for dx in range(3))

    kernel = functools.partial(_conv_block_kernel, shifts=shifts,
                               inv_n=1.0 / float(B * H * W))

    vmem = pl.BlockSpec(memory_space=pltpu.MemorySpace.VMEM)
    out = pl.pallas_call(
        kernel,
        out_shape=jax.ShapeDtypeStruct((Cop, N), f32),
        in_specs=[vmem] * 10,
        out_specs=vmem,
    )(xflat, mask, w1m, b1c, g1c, be1c, w2m, b2c, g2c, be2c)

    # ---- unpack: drop channel/lane padding and the zero ring, back to NCHW ----
    out = out[:C_out, :Nv].reshape(C_out, B, Hp, Wp)[:, :, 1:H + 1, 1:W + 1]
    return jnp.transpose(out, (1, 0, 2, 3))


def init_params(key, ch_in, ch_out):
    """Deterministic synthetic parameters (shapes match the PyTorch module)."""
    ks = jax.random.split(key, 8)
    s = 0.1

    def nrm(k, shape, scale=s, shift=0.0):
        return jax.random.normal(k, shape, jnp.float32) * scale + shift

    return {
        "w1": nrm(ks[0], (ch_out, ch_in, 3, 3)),
        "b1": nrm(ks[1], (ch_out,)),
        "bn1_gamma": nrm(ks[2], (ch_out,), shift=1.0),
        "bn1_beta": nrm(ks[3], (ch_out,)),
        "w2": nrm(ks[4], (ch_out, ch_out, 3, 3)),
        "b2": nrm(ks[5], (ch_out,)),
        "bn2_gamma": nrm(ks[6], (ch_out,), shift=1.0),
        "bn2_beta": nrm(ks[7], (ch_out,)),
    }


def _reference(x, params):
    """Pure-JAX reference of the same forward pass (dropout = identity)."""
    def conv_bn_relu(x, w, b, g, be):
        y = jax.lax.conv_general_dilated(
            x, w, window_strides=(1, 1), padding=((1, 1), (1, 1)),
            dimension_numbers=("NCHW", "OIHW", "NCHW"),
            precision=jax.lax.Precision.HIGHEST)
        y = y + b[None, :, None, None]
        mu = jnp.mean(y, axis=(0, 2, 3), keepdims=True)
        var = jnp.mean((y - mu) ** 2, axis=(0, 2, 3), keepdims=True)
        y = (y - mu) * jax.lax.rsqrt(var + BN_EPS)
        y = y * g[None, :, None, None] + be[None, :, None, None]
        return jnp.maximum(y, 0.0)

    y = conv_bn_relu(x, params["w1"], params["b1"],
                     params["bn1_gamma"], params["bn1_beta"])
    y = conv_bn_relu(y, params["w2"], params["b2"],
                     params["bn2_gamma"], params["bn2_beta"])
    return y


if __name__ == "__main__":
    B, C_in, C_out, H, W = 2, 4, 8, 16, 16

    key = jax.random.PRNGKey(0)
    kx, kp = jax.random.split(key)
    x = jax.random.normal(kx, (B, C_in, H, W), jnp.float32)
    params = init_params(kp, C_in, C_out)

    out = conv_block_forward(x, params)
    jax.block_until_ready(out)
    assert out.shape == (B, C_out, H, W), out.shape
    assert bool(jnp.all(jnp.isfinite(out)))

    ref = _reference(x, params)
    err = float(jnp.max(jnp.abs(out - ref)))
    assert err < 1e-2, f"max|diff| vs reference = {err}"
    print("KERNEL_OK")
</pallas_src>

<mosaic_0001>
module attributes {stable_mosaic.version = 11 : i64} {
  func.func @_conv_block_kernel(%arg0: memref<8x768xf32, #tpu.memory_space<vmem>>, %arg1: memref<1x768xf32, #tpu.memory_space<vmem>>, %arg2: memref<8x72xf32, #tpu.memory_space<vmem>>, %arg3: memref<8x1xf32, #tpu.memory_space<vmem>>, %arg4: memref<8x1xf32, #tpu.memory_space<vmem>>, %arg5: memref<8x1xf32, #tpu.memory_space<vmem>>, %arg6: memref<8x72xf32, #tpu.memory_space<vmem>>, %arg7: memref<8x1xf32, #tpu.memory_space<vmem>>, %arg8: memref<8x1xf32, #tpu.memory_space<vmem>>, %arg9: memref<8x1xf32, #tpu.memory_space<vmem>>, %arg10: memref<8x768xf32, #tpu.memory_space<vmem>>) attributes {dimension_semantics = [], scalar_prefetch = 0 : i64, scratch_operands = 0 : i64, tpu.core_type = #tpu.core_type<tc>} {
    %c0 = arith.constant 0 : index
    %c0_0 = arith.constant 0 : index
    %0 = vector.load %arg1[%c0, %c0_0] : memref<1x768xf32, #tpu.memory_space<vmem>>, vector<1x768xf32>
    %c0_1 = arith.constant 0 : index
    %c0_2 = arith.constant 0 : index
    %1 = vector.load %arg0[%c0_1, %c0_2] : memref<8x768xf32, #tpu.memory_space<vmem>>, vector<8x768xf32>
    %c19_i32 = arith.constant 19 : i32
    %2 = tpu.dynamic_rotate %1 by %c19_i32 dim 1 : vector<8x768xf32>, i32 -> vector<8x768xf32>
    %c18_i32 = arith.constant 18 : i32
    %3 = tpu.dynamic_rotate %1 by %c18_i32 dim 1 : vector<8x768xf32>, i32 -> vector<8x768xf32>
    %c17_i32 = arith.constant 17 : i32
    %4 = tpu.dynamic_rotate %1 by %c17_i32 dim 1 : vector<8x768xf32>, i32 -> vector<8x768xf32>
    %c1_i32 = arith.constant 1 : i32
    %5 = tpu.dynamic_rotate %1 by %c1_i32 dim 1 : vector<8x768xf32>, i32 -> vector<8x768xf32>
    %c767_i32 = arith.constant 767 : i32
    %6 = tpu.dynamic_rotate %1 by %c767_i32 dim 1 : vector<8x768xf32>, i32 -> vector<8x768xf32>
    %c751_i32 = arith.constant 751 : i32
    %7 = tpu.dynamic_rotate %1 by %c751_i32 dim 1 : vector<8x768xf32>, i32 -> vector<8x768xf32>
    %c750_i32 = arith.constant 750 : i32
    %8 = tpu.dynamic_rotate %1 by %c750_i32 dim 1 : vector<8x768xf32>, i32 -> vector<8x768xf32>
    %c749_i32 = arith.constant 749 : i32
    %9 = tpu.dynamic_rotate %1 by %c749_i32 dim 1 : vector<8x768xf32>, i32 -> vector<8x768xf32>
    %10 = tpu.concatenate %2, %3, %4, %5, %1, %6, %7, %8, %9 in 0 : vector<8x768xf32>, vector<8x768xf32>, vector<8x768xf32>, vector<8x768xf32>, vector<8x768xf32>, vector<8x768xf32>, vector<8x768xf32>, vector<8x768xf32>, vector<8x768xf32> -> vector<72x768xf32>
    %c0_3 = arith.constant 0 : index
    %c0_4 = arith.constant 0 : index
    %11 = vector.load %arg2[%c0_3, %c0_4] : memref<8x72xf32, #tpu.memory_space<vmem>>, vector<8x72xf32>
    %cst = arith.constant dense<0.000000e+00> : vector<8x768xf32>
    %12 = tpu.matmul %11, %10, %cst {dimension_numbers = #tpu.dot_dimension_numbers<[1], [0], [0], [1], [0, 0, 1, 1], [], []>} : vector<8x72xf32>, vector<72x768xf32>, vector<8x768xf32> -> vector<8x768xf32>
    %c0_5 = arith.constant 0 : index
    %c0_6 = arith.constant 0 : index
    %13 = vector.load %arg3[%c0_5, %c0_6] : memref<8x1xf32, #tpu.memory_space<vmem>>, vector<8x1xf32>
    %14 = vector.broadcast %13 : vector<8x1xf32> to vector<8x768xf32>
    %15 = arith.addf %12, %14 : vector<8x768xf32>
    %16 = vector.broadcast %0 : vector<1x768xf32> to vector<8x768xf32>
    %17 = arith.mulf %15, %16 : vector<8x768xf32>
    %cst_7 = arith.constant dense<0.000000e+00> : vector<8xf32>
    %18 = vector.multi_reduction <add>, %17, %cst_7 [1] : vector<8x768xf32> to vector<8xf32>
    %19 = vector.shape_cast %18 : vector<8xf32> to vector<8x1xf32>
    %20 = arith.mulf %17, %17 : vector<8x768xf32>
    %cst_8 = arith.constant dense<0.000000e+00> : vector<8xf32>
    %21 = vector.multi_reduction <add>, %20, %cst_8 [1] : vector<8x768xf32> to vector<8xf32>
    %22 = vector.shape_cast %21 : vector<8xf32> to vector<8x1xf32>
    %cst_9 = arith.constant 0.001953125 : f32
    %23 = vector.broadcast %cst_9 : f32 to vector<8x1xf32>
    %24 = arith.mulf %19, %23 : vector<8x1xf32>
    %cst_10 = arith.constant 0.001953125 : f32
    %25 = vector.broadcast %cst_10 : f32 to vector<8x1xf32>
    %26 = arith.mulf %22, %25 : vector<8x1xf32>
    %27 = arith.mulf %24, %24 : vector<8x1xf32>
    %28 = arith.subf %26, %27 : vector<8x1xf32>
    %29 = vector.broadcast %24 : vector<8x1xf32> to vector<8x768xf32>
    %30 = arith.subf %17, %29 : vector<8x768xf32>
    %cst_11 = arith.constant 9.99999974E-6 : f32
    %31 = vector.broadcast %cst_11 : f32 to vector<8x1xf32>
    %32 = arith.addf %28, %31 : vector<8x1xf32>
    %33 = math.rsqrt %32 : vector<8x1xf32>
    %34 = vector.broadcast %33 : vector<8x1xf32> to vector<8x768xf32>
    %35 = arith.mulf %30, %34 : vector<8x768xf32>
    %c0_12 = arith.constant 0 : index
    %c0_13 = arith.constant 0 : index
    %36 = vector.load %arg4[%c0_12, %c0_13] : memref<8x1xf32, #tpu.memory_space<vmem>>, vector<8x1xf32>
    %37 = vector.broadcast %36 : vector<8x1xf32> to vector<8x768xf32>
    %38 = arith.mulf %35, %37 : vector<8x768xf32>
    %c0_14 = arith.constant 0 : index
    %c0_15 = arith.constant 0 : index
    %39 = vector.load %arg5[%c0_14, %c0_15] : memref<8x1xf32, #tpu.memory_space<vmem>>, vector<8x1xf32>
    %40 = vector.broadcast %39 : vector<8x1xf32> to vector<8x768xf32>
    %41 = arith.addf %38, %40 : vector<8x768xf32>
    %cst_16 = arith.constant 0.000000e+00 : f32
    %42 = vector.broadcast %cst_16 : f32 to vector<8x768xf32>
    %43 = arith.maximumf %41, %42 : vector<8x768xf32>
    %44 = vector.broadcast %0 : vector<1x768xf32> to vector<8x768xf32>
    %45 = arith.mulf %43, %44 : vector<8x768xf32>
    %c19_i32_17 = arith.constant 19 : i32
    %46 = tpu.dynamic_rotate %45 by %c19_i32_17 dim 1 : vector<8x768xf32>, i32 -> vector<8x768xf32>
    %c18_i32_18 = arith.constant 18 : i32
    %47 = tpu.dynamic_rotate %45 by %c18_i32_18 dim 1 : vector<8x768xf32>, i32 -> vector<8x768xf32>
    %c17_i32_19 = arith.constant 17 : i32
    %48 = tpu.dynamic_rotate %45 by %c17_i32_19 dim 1 : vector<8x768xf32>, i32 -> vector<8x768xf32>
    %c1_i32_20 = arith.constant 1 : i32
    %49 = tpu.dynamic_rotate %45 by %c1_i32_20 dim 1 : vector<8x768xf32>, i32 -> vector<8x768xf32>
    %c767_i32_21 = arith.constant 767 : i32
    %50 = tpu.dynamic_rotate %45 by %c767_i32_21 dim 1 : vector<8x768xf32>, i32 -> vector<8x768xf32>
    %c751_i32_22 = arith.constant 751 : i32
    %51 = tpu.dynamic_rotate %45 by %c751_i32_22 dim 1 : vector<8x768xf32>, i32 -> vector<8x768xf32>
    %c750_i32_23 = arith.constant 750 : i32
    %52 = tpu.dynamic_rotate %45 by %c750_i32_23 dim 1 : vector<8x768xf32>, i32 -> vector<8x768xf32>
    %c749_i32_24 = arith.constant 749 : i32
    %53 = tpu.dynamic_rotate %45 by %c749_i32_24 dim 1 : vector<8x768xf32>, i32 -> vector<8x768xf32>
    %54 = tpu.concatenate %46, %47, %48, %49, %45, %50, %51, %52, %53 in 0 : vector<8x768xf32>, vector<8x768xf32>, vector<8x768xf32>, vector<8x768xf32>, vector<8x768xf32>, vector<8x768xf32>, vector<8x768xf32>, vector<8x768xf32>, vector<8x768xf32> -> vector<72x768xf32>
    %c0_25 = arith.constant 0 : index
    %c0_26 = arith.constant 0 : index
    %55 = vector.load %arg6[%c0_25, %c0_26] : memref<8x72xf32, #tpu.memory_space<vmem>>, vector<8x72xf32>
    %cst_27 = arith.constant dense<0.000000e+00> : vector<8x768xf32>
    %56 = tpu.matmul %55, %54, %cst_27 {dimension_numbers = #tpu.dot_dimension_numbers<[1], [0], [0], [1], [0, 0, 1, 1], [], []>} : vector<8x72xf32>, vector<72x768xf32>, vector<8x768xf32> -> vector<8x768xf32>
    %c0_28 = arith.constant 0 : index
    %c0_29 = arith.constant 0 : index
    %57 = vector.load %arg7[%c0_28, %c0_29] : memref<8x1xf32, #tpu.memory_space<vmem>>, vector<8x1xf32>
    %58 = vector.broadcast %57 : vector<8x1xf32> to vector<8x768xf32>
    %59 = arith.addf %56, %58 : vector<8x768xf32>
    %60 = vector.broadcast %0 : vector<1x768xf32> to vector<8x768xf32>
    %61 = arith.mulf %59, %60 : vector<8x768xf32>
    %cst_30 = arith.constant dense<0.000000e+00> : vector<8xf32>
    %62 = vector.multi_reduction <add>, %61, %cst_30 [1] : vector<8x768xf32> to vector<8xf32>
    %63 = vector.shape_cast %62 : vector<8xf32> to vector<8x1xf32>
    %64 = arith.mulf %61, %61 : vector<8x768xf32>
    %cst_31 = arith.constant dense<0.000000e+00> : vector<8xf32>
    %65 = vector.multi_reduction <add>, %64, %cst_31 [1] : vector<8x768xf32> to vector<8xf32>
    %66 = vector.shape_cast %65 : vector<8xf32> to vector<8x1xf32>
    %cst_32 = arith.constant 0.001953125 : f32
    %67 = vector.broadcast %cst_32 : f32 to vector<8x1xf32>
    %68 = arith.mulf %63, %67 : vector<8x1xf32>
    %cst_33 = arith.constant 0.001953125 : f32
    %69 = vector.broadcast %cst_33 : f32 to vector<8x1xf32>
    %70 = arith.mulf %66, %69 : vector<8x1xf32>
    %71 = arith.mulf %68, %68 : vector<8x1xf32>
    %72 = arith.subf %70, %71 : vector<8x1xf32>
    %73 = vector.broadcast %68 : vector<8x1xf32> to vector<8x768xf32>
    %74 = arith.subf %61, %73 : vector<8x768xf32>
    %cst_34 = arith.constant 9.99999974E-6 : f32
    %75 = vector.broadcast %cst_34 : f32 to vector<8x1xf32>
    %76 = arith.addf %72, %75 : vector<8x1xf32>
    %77 = math.rsqrt %76 : vector<8x1xf32>
    %78 = vector.broadcast %77 : vector<8x1xf32> to vector<8x768xf32>
    %79 = arith.mulf %74, %78 : vector<8x768xf32>
    %c0_35 = arith.constant 0 : index
    %c0_36 = arith.constant 0 : index
    %80 = vector.load %arg8[%c0_35, %c0_36] : memref<8x1xf32, #tpu.memory_space<vmem>>, vector<8x1xf32>
    %81 = vector.broadcast %80 : vector<8x1xf32> to vector<8x768xf32>
    %82 = arith.mulf %79, %81 : vector<8x768xf32>
    %c0_37 = arith.constant 0 : index
    %c0_38 = arith.constant 0 : index
    %83 = vector.load %arg9[%c0_37, %c0_38] : memref<8x1xf32, #tpu.memory_space<vmem>>, vector<8x1xf32>
    %84 = vector.broadcast %83 : vector<8x1xf32> to vector<8x768xf32>
    %85 = arith.addf %82, %84 : vector<8x768xf32>
    %cst_39 = arith.constant 0.000000e+00 : f32
    %86 = vector.broadcast %cst_39 : f32 to vector<8x768xf32>
    %87 = arith.maximumf %85, %86 : vector<8x768xf32>
    %88 = vector.broadcast %0 : vector<1x768xf32> to vector<8x768xf32>
    %89 = arith.mulf %87, %88 : vector<8x768xf32>
    %c0_40 = arith.constant 0 : index
    %c0_41 = arith.constant 0 : index
    %90 = vector.load %arg10[%c0_40, %c0_41] : memref<8x768xf32, #tpu.memory_space<vmem>>, vector<8x768xf32>
    tpu.vector_store %arg10[%c0_40, %c0_41], %89 {strides = array<i32>} : memref<8x768xf32, #tpu.memory_space<vmem>>, vector<8x768xf32>,
    return
  }
}

</mosaic_0001>

<bundles_post_ra>
// kernel: tpu_custom_call.1
= control target key start
LH: loop header
LB: loop body
LE: loop exit
PB: predicated region body
PF: predicated region fallthrough
CT: control target
= control target key end

     0   :  { %15 = vsyncpa [#allocation3], 0  ;;  %s2113_s0 = inlined_call_operand.vmem [shape: f32[8,768], index: 0, kind: input, shape index: {}]   ;;  %s2114_s1 = inlined_call_operand.hbm [shape: f32[1,768], index: 1, kind: input, shape index: {}]   ;;  %s2115_s2 = inlined_call_operand.vmem [shape: f32[8,72], index: 2, kind: input, shape index: {}]   ;;  %s2116_s3 = inlined_call_operand.vmem [shape: f32[8,1], index: 3, kind: input, shape index: {}]   ;;  %s2117_s4 = inlined_call_operand.vmem [shape: f32[8,1], index: 4, kind: input, shape index: {}]   ;;  %s2118_s5 = inlined_call_operand.vmem [shape: f32[8,1], index: 5, kind: input, shape index: {}]   ;;  %s2119_s6 = inlined_call_operand.vmem [shape: f32[8,72], index: 6, kind: input, shape index: {}]   ;;  %s2120_s7 = inlined_call_operand.vmem [shape: f32[8,1], index: 7, kind: input, shape index: {}]   ;;  %s2121_s8 = inlined_call_operand.vmem [shape: f32[8,1], index: 8, kind: input, shape index: {}]   ;;  %s2122_s9 = inlined_call_operand.vmem [shape: f32[8,1], index: 9, kind: input, shape index: {}]   ;;  %s2123_s10 = inlined_call_operand.hbm [shape: f32[8,768], index: 10, kind: output, shape index: {}]  }
   0x1   :  { %16 = vsyncpa [#allocation4], 0  ;;  %s1360_s13 = smov [#allocation2]   ;;  %s1312_s17 = scalar_lea.hbm %s2114_s1, 96 }
   0x2   :  { %s25_s14 = sshll.u32 %s1360_s13, 4  ;;  %p1313_p0 = scmp.ne.s32.totalorder %s2114_s1, %s1312_s17  ;;  %s26_s14 = int_to_ptr.vmem [resolvable:$true] %s25_s14 }
   0x3   :  { %p1316_p1 = scmp.lt.u32.totalorder %s1312_s17, %s2114_s1 }
   0x5   :  { %p1318_p2 = pnand %p1316_p1, %p1313_p0 }
   0x7   :  { %1321 = shalt.err (!%p1318_p2)
}
   0x8   :  { %s1322_s22 = scalar_lea.vmem %s26_s14, 96  ;;  %p1327_p4 = scmp.lt.s32.totalorder %s26_s14, %s26_s14 }
   0x9   :  { %p1323_p3 = scmp.ne.s32.totalorder %s26_s14, %s1322_s22  ;;  %p1328_p5 = scmp.lt.s32.totalorder %s1322_s22, %s1322_s22 }
   0xb   :  { %p1329_p6 = por %p1328_p5, %p1327_p4 }
   0xd   :  { %p1330_p7 = pnand %p1329_p6, %p1323_p3 }
   0xf   :  { %1333 = shalt.err (!%p1330_p7)
}
  0x10   :  { %28 = dma.hbm_to_vmem [thread:$0]  %s2114_s1, 96, %s26_s14, [#allocation3]  }
  0x11   :  { %1356 = dma.done.wait [#allocation3], 96  }
  0x12   :  { %1357 = vsyncadd [#allocation3], 4294967200  ;;  %v1442_v0 = vld [vmem:[%s2113_s0 + $0x10] sm:$0xff]  ;;  %v1447_v1 = vld [vmem:[%s2113_s0 + $0x28] sm:$0xff]  ;;  %s1361_s12 = smov 19   ;;  %s1362_s13 = smov 18   ;;  %v67_v13 = vlaneseq }
  0x13   :  { %v1452_v2 = vld [vmem:[%s2113_s0] sm:$0xff]  ;;  %v1136_v3 = vpack.i.bf16 %v1442_v0, %v1447_v1  ;;  %v1459_v4 = vld [vmem:[%s2113_s0 + $0x8] sm:$0xff]  ;;  %s1363_s14 = smov 1   ;;  %s1364_s15 = smov 17   ;;  %v1481_v7 = vld [vmem:[%s2113_s0 + $0x18] sm:$0xff]  ;;  %v1368_v10 = vmov 0.0  }
  0x14   :  { %v1126_v5 = vpack.i.bf16 %v1459_v4, %v1452_v2  ;;  %v1166_v6 = vpack.i.bf16 %v1442_v0, %v1459_v4  ;;  %s1365_s16 = smov 127   ;;  %s1366_s17 = smov 110   ;;  %v1486_v8 = vld [vmem:[%s2113_s0 + $0x20] sm:$0xff]  ;;  %284 = vmatprep.mubr.f32.mxu0 %v1368_v10  ;;  %355 = vmatprep.mubr.f32.mxu1 %v1368_v10  ;;  %v1370_v11 = vmov 0   ;;  %v1529_v16 = vand.u32 127, %v67_v13 }
  0x15   :  { %1137 = vrot.lane.b32.xlu1 %v1136_v3, %s1361_s12  ;;  %s1367_s18 = smov 111   ;;  %v1186_v9 = vpack.i.bf16 %v1486_v8, %v1481_v7  ;;  %s1369_s0 = smov 109   ;;  %1216 = vset.pattern.permute.xlu0 %v1370_v11  ;;  %v210_v12 = vld [vmem:[%s2116_s3] sm:$0xff]  ;;  %vm216_vm8 = vcmask 588800  }
  0x16   :  { %1127 = vrot.lane.b32.xlu0 %v1126_v5, %s1361_s12  ;;  %1217 = vset.pattern.permute.xlu1 %v1370_v11  ;;  %vm69_vm0 = vcmp.lt.s32.totalorder %v1529_v16, 19  ;;  %vm88_vm1 = vcmp.lt.s32.totalorder %v1529_v16, 18  ;;  %vm107_vm2 = vcmp.lt.s32.totalorder %v1529_v16, 17  ;;  %vm126_vm3 = vcmp.lt.s32.totalorder %v1529_v16, 1 }
  0x17   :  { %vm145_vm4 = vcmp.lt.s32.totalorder %v1529_v16, 127  ;;  %vm183_vm5 = vcmp.lt.s32.totalorder %v1529_v16, 110  ;;  %vm164_vm6 = vcmp.lt.s32.totalorder %v1529_v16, 111  ;;  %vm202_vm7 = vcmp.lt.s32.totalorder %v1529_v16, 109 }
  0x19   :  { %1142 = vrot.lane.b32.xlu1 %v1136_v3, %s1362_s13 }
  0x1a   :  { %1132 = vrot.lane.b32.xlu0 %v1126_v5, %s1362_s13 }
  0x1d   :  { %1152 = vrot.lane.b32.xlu1 %v1126_v5, %s1363_s14 }
  0x1e   :  { %1147 = vrot.lane.b32.xlu0 %v1126_v5, %s1364_s15 }
  0x21   :  { %1162 = vrot.lane.b32.xlu1 %v1136_v3, %s1363_s14 }
  0x22   :  { %1157 = vrot.lane.b32.xlu0 %v1136_v3, %s1364_s15 }
  0x25   :  { %133 = vrot.lane.b32.xlu1 %v1452_v2, %s1365_s16 }
  0x26   :  { %1167 = vrot.lane.b32.xlu0 %v1166_v6, %s1365_s16 }
  0x29   :  { %1177 = vrot.lane.b32.xlu1 %v1166_v6, %s1366_s17 }
  0x2a   :  { %1172 = vrot.lane.b32.xlu0 %v1166_v6, %s1367_s18 }
  0x2d   :  { %171 = vrot.lane.b32.xlu1 %v1452_v2, %s1366_s17 }
  0x2e   :  { %152 = vrot.lane.b32.xlu0 %v1452_v2, %s1367_s18 }
  0x31   :  { %1187 = vrot.lane.b32.xlu1 %v1186_v9, %s1362_s13 }
  0x32   :  { %1182 = vrot.lane.b32.xlu0 %v1186_v9, %s1361_s12 }
  0x35   :  { %1197 = vrot.lane.b32.xlu1 %v1186_v9, %s1363_s14 }
  0x36   :  { %1192 = vrot.lane.b32.xlu0 %v1186_v9, %s1364_s15 }
  0x39   :  { %194 = vrot.lane.b32.xlu1 %v1442_v0, %s1369_s0 }
  0x3a   :  { %192 = vrot.lane.b32.xlu0 %v1459_v4, %s1369_s0 }
  0x3d   :  { %1202 = vrot.lane.b32.xlu1 %v1186_v9, %s1365_s16 }
  0x3e   :  { %190 = vrot.lane.b32.xlu0 %v1452_v2, %s1369_s0 }
  0x41   :  { %1207 = vrot.lane.b32.xlu1 %v1186_v9, %s1367_s18 }
  0x42   :  { %143 = vrot.lane.b32.xlu0 %v1447_v1, %s1365_s16 }
  0x45   :  { %162 = vrot.lane.b32.xlu1 %v1447_v1, %s1367_s18 }
  0x46   :  { %1212 = vrot.lane.b32.xlu0 %v1186_v9, %s1366_s17 }
  0x49   :  { %196 = vrot.lane.b32.xlu1 %v1481_v7, %s1369_s0 }
  0x4a   :  { %181 = vrot.lane.b32.xlu0 %v1447_v1, %s1366_s17 }
  0x4d   :  { %200 = vrot.lane.b32.xlu1 %v1447_v1, %s1369_s0 }
  0x4e   :  { %198 = vrot.lane.b32.xlu0 %v1486_v8, %s1369_s0 }
  0x52   :  { %213 = vperm.xlu0 %1216, %v210_v12  }
  0x87   :  { %v1524_v14 = vpop.permute.xlu1 %1137 }
  0x88   :  { %v1526_v15 = vpop.permute.xlu0 %1127  ;;  %v1139_v17 = vunpack.i.l.bf16 %v1524_v14  ;;  %v1140_v12 = vunpack.i.h.bf16 %v1524_v14 }
  0x89   :  { %v1130_v18 = vunpack.i.h.bf16 %v1526_v15  ;;  %v1129_v19 = vunpack.i.l.bf16 %v1526_v15 }
  0x8b   :  { %v1534_v20 = vpop.permute.xlu1 %1142  ;;  %v74_v26 = vsel %vm69_vm0, %v1129_v19, %v1130_v18  ;;  %v75_v28 = vsel %vm69_vm0, %v1139_v17, %v1129_v19 }
  0x8c   :  { %v1144_v21 = vunpack.i.l.bf16 %v1534_v20  ;;  %v1537_v22 = vpop.permute.xlu0 %1132  ;;  %v1145_v6 = vunpack.i.h.bf16 %v1534_v20 }
  0x8d   :  { %v1135_v23 = vunpack.i.h.bf16 %v1537_v22  ;;  %v1134_v24 = vunpack.i.l.bf16 %v1537_v22 }
  0x8f   :  { %v1545_v25 = vpop.permute.xlu1 %1152  ;;  %v93_v27 = vsel %vm88_vm1, %v1134_v24, %v1135_v23  ;;  %v94_v29 = vsel %vm88_vm1, %v1144_v21, %v1134_v24 }
  0x90   :  { %v1155_v30 = vunpack.i.h.bf16 %v1545_v25  ;;  %v1154_v31 = vunpack.i.l.bf16 %v1545_v25  ;;  %v1565_v32 = vpop.permute.xlu0 %1147  ;;  %v1018_v33 = vpack.c.bf16 %v93_v27, %v74_v26  ;;  %v1020_v34 = vpack.c.bf16 %v94_v29, %v75_v28 }
  0x91   :  { %v1150_v35 = vunpack.i.h.bf16 %v1565_v32  ;;  %v1149_v36 = vunpack.i.l.bf16 %v1565_v32 }
  0x92   :  { %1019 = vmatprep.subr.bf16.mxu0 %v1018_v33  ;;  %v131_v37 = vsel %vm126_vm3, %v1154_v31, %v1155_v30 }
  0x93   :  { %1021 = vmatpush1.bf16.msra.mxu0 %v1020_v34  ;;  %v1573_v38 = vpop.permute.xlu1 %1162  ;;  %v112_v39 = vsel %vm107_vm2, %v1149_v36, %v1150_v35 }
  0x94   :  { %v1164_v40 = vunpack.i.l.bf16 %v1573_v38  ;;  %v1580_v41 = vpop.permute.xlu0 %1157  ;;  %v1022_v42 = vpack.c.bf16 %v131_v37, %v112_v39  ;;  %v1165_v27 = vunpack.i.h.bf16 %v1573_v38 }
  0x95   :  { %v1159_v43 = vunpack.i.l.bf16 %v1580_v41  ;;  %v1160_v28 = vunpack.i.h.bf16 %v1580_v41 }
  0x96   :  { %1023 = vmatprep.subr.bf16.mxu0 %v1022_v42  ;;  %v132_v44 = vsel %vm126_vm3, %v1164_v40, %v1154_v31  ;;  %v92_v31 = vsel %vm88_vm1, %v1135_v23, %v1145_v6  ;;  %v73_v42 = vsel %vm69_vm0, %v1130_v18, %v1140_v12  ;;  %v130_v15 = vsel %vm126_vm3, %v1155_v30, %v1165_v27 }
  0x97   :  { %v1587_v45 = vpop.permute.xlu1 %133  ;;  %v113_v46 = vsel %vm107_vm2, %v1159_v43, %v1149_v36 }
  0x98   :  { %v1593_v47 = vpop.permute.xlu0 %1167  ;;  %v1024_v48 = vpack.c.bf16 %v132_v44, %v113_v46 }
  0x99   :  { %v1170_v49 = vunpack.i.h.bf16 %v1593_v47  ;;  %v1169_v50 = vunpack.i.l.bf16 %v1593_v47 }
  0x9a   :  { %1025 = vmatpush1.bf16.msra.mxu0 %v1024_v48  ;;  %v1036_v48 = vpack.c.bf16 %v92_v31, %v73_v42 }
  0x9b   :  { %v1598_v51 = vpop.permute.xlu1 %1177  ;;  %v149_v52 = vsel %vm145_vm4, %v1169_v50, %v1170_v49  ;;  %v150_v53 = vsel %vm145_vm4, %v1587_v45, %v1169_v50  ;;  %v111_v50 = vsel %vm107_vm2, %v1150_v35, %v1160_v28 }
  0x9c   :  { %v1180_v54 = vunpack.i.h.bf16 %v1598_v51  ;;  %v1179_v55 = vunpack.i.l.bf16 %v1598_v51  ;;  %v1611_v56 = vpop.permute.xlu0 %1172  ;;  %v1026_v57 = vpack.c.bf16 %v149_v52, %v1459_v4  ;;  %v1028_v58 = vpack.c.bf16 %v150_v53, %v1452_v2 }
  0x9d   :  { %v1175_v59 = vunpack.i.h.bf16 %v1611_v56  ;;  %v1174_v60 = vunpack.i.l.bf16 %v1611_v56  ;;  %v1040_v35 = vpack.c.bf16 %v130_v15, %v111_v50 }
  0x9e   :  { %1027 = vmatprep.subr.bf16.mxu0 %v1026_v57  ;;  %v187_v61 = vsel %vm183_vm5, %v1179_v55, %v1180_v54 }
  0x9f   :  { %1029 = vmatpush1.bf16.msra.mxu0 %v1028_v58  ;;  %v1621_v62 = vpop.permute.xlu1 %171  ;;  %v168_v63 = vsel %vm164_vm6, %v1174_v60, %v1175_v59 }
  0xa0   :  { %v188_v2 = vsel %vm183_vm5, %v1621_v62, %v1179_v55  ;;  %v1630_v3 = vpop.permute.xlu0 %152  ;;  %v1030_v4 = vpack.c.bf16 %v187_v61, %v168_v63 }
  0xa1   :  { %v169_v5 = vsel %vm164_vm6, %v1630_v3, %v1174_v60 }
  0xa2   :  { %v1032_v9 = vpack.c.bf16 %v188_v2, %v169_v5  ;;  %1031 = vmatprep.subr.bf16.mxu0 %v1030_v4 }
  0xa3   :  { %v1188_v11 = vpop.permute.xlu1 %1187 }
  0xa4   :  { %v1189_v19 = vunpack.i.l.bf16 %v1188_v11  ;;  %v1183_v24 = vpop.permute.xlu0 %1182  ;;  %1033 = vmatpush1.bf16.msra.mxu0 %v1032_v9  ;;  %v1190_v44 = vunpack.i.h.bf16 %v1188_v11 }
  0xa5   :  { %v1184_v26 = vunpack.i.l.bf16 %v1183_v24  ;;  %v1185_v22 = vunpack.i.h.bf16 %v1183_v24 }
  0xa6   :  { %v91_v29 = vsel %vm88_vm1, %v1145_v6, %v1189_v19  ;;  %v90_v32 = vsel %vm88_vm1, %v1189_v19, %v1190_v44  ;;  %v89_v61 = vsel %vm88_vm1, %v1190_v44, %v1144_v21  ;;  %v1684_v6 = vld [vmem:[%s2115_s2] sm:$0xff] }
  0xa7   :  { %v1198_v33 = vpop.permute.xlu1 %1197  ;;  %v72_v34 = vsel %vm69_vm0, %v1140_v12, %v1184_v26  ;;  %v71_v30 = vsel %vm69_vm0, %v1184_v26, %v1185_v22  ;;  %v70_v60 = vsel %vm69_vm0, %v1185_v22, %v1139_v17 }
  0xa8   :  { %v1199_v36 = vunpack.i.l.bf16 %v1198_v33  ;;  %v1193_v37 = vpop.permute.xlu0 %1192  ;;  %v1034_v39 = vpack.c.bf16 %v91_v29, %v72_v34  ;;  %v1200_v53 = vunpack.i.h.bf16 %v1198_v33  ;;  %v1052_v20 = vpack.c.bf16 %v90_v32, %v71_v30 }
  0xa9   :  { %v1194_v46 = vunpack.i.l.bf16 %v1193_v37  ;;  %v1195_v55 = vunpack.i.h.bf16 %v1193_v37  ;;  %v1050_v9 = vpack.c.bf16 %v89_v61, %v70_v60 }
  0xaa   :  { %1035 = vmatprep.subr.bf16.mxu1 %v1034_v39  ;;  %v129_v23 = vsel %vm126_vm3, %v1165_v27, %v1199_v36  ;;  %v127_v17 = vsel %vm126_vm3, %v1200_v53, %v1164_v40  ;;  %v128_v11 = vsel %vm126_vm3, %v1199_v36, %v1200_v53 }
  0xab   :  { %1037 = vmatpush1.bf16.msra.mxu1 %v1036_v48  ;;  %v1662_v18 = vpop.permute.xlu1 %194  ;;  %v110_v52 = vsel %vm107_vm2, %v1160_v28, %v1194_v46  ;;  %v108_v14 = vsel %vm107_vm2, %v1195_v55, %v1159_v43  ;;  %v109_v12 = vsel %vm107_vm2, %v1194_v46, %v1195_v55 }
  0xac   :  { %v193_v57 = vpop.permute.xlu0 %192  ;;  %v1038_v58 = vpack.c.bf16 %v129_v23, %v110_v52  ;;  %v1054_v43 = vpack.c.bf16 %v127_v17, %v108_v14 }
  0xad   :  { %v206_v25 = vsel %vm202_vm7, %v193_v57, %v1662_v18 }
  0xae   :  { %236 = vmatprep.subr.mxu0 %v206_v25  ;;  %1039 = vmatprep.subr.bf16.mxu1 %v1038_v58  ;;  %v48_v25 = vld [vmem:[#allocation2] sm:$0x3f] }
  0xaf   :  { %1041 = vmatpush1.bf16.msra.mxu1 %v1040_v35  ;;  %v1203_v63 = vpop.permute.xlu1 %1202 }
  0xb0   :  { %v1205_v2 = vunpack.i.h.bf16 %v1203_v63  ;;  %v1204_v4 = vunpack.i.l.bf16 %v1203_v63  ;;  %v191_v5 = vpop.permute.xlu0 %190 }
  0xb1   :  { %v207_v21 = vsel %vm202_vm7, %v191_v5, %v193_v57  ;;  %v435_v57 = vshrl.u32 %v67_v13, 7 }
  0xb2   :  { %237 = vmatpush1.msra.mxu0 %v207_v21  ;;  %v147_v41 = vsel %vm145_vm4, %v1204_v4, %v1205_v2  ;;  %v148_v38 = vsel %vm145_vm4, %v1170_v49, %v1204_v4  ;;  %v1056_v49 = vpack.c.bf16 %v128_v11, %v109_v12 }
  0xb3   :  { %1051 = vmatprep.subr.bf16.mxu0 %v1050_v9  ;;  %v1208_v40 = vpop.permute.xlu1 %1207  ;;  %1012 = vmatmul.mubr.msk.f32.vlgmr.msra.gmra.mrb[0].mxu0 %vm216_vm8, %v1684_v6  ;;  %v1042_v19 = vpack.c.bf16 %v147_v41, %v1481_v7  ;;  %v1044_v24 = vpack.c.bf16 %v148_v38, %v1442_v0  ;;  %v440_v58 = vsub.s32 1, %v435_v57  ;;  %v444_v63 = vsub.s32 2, %v435_v57 }
  0xb4   :  { %v144_v26 = vpop.permute.xlu0 %143  ;;  %1053 = vmatpush1.bf16.msra.mxu0 %v1052_v20  ;;  %426 = vmatprep.mubr.f32.mxu0 %v1368_v10  ;;  %v1210_v27 = vunpack.i.h.bf16 %v1208_v40  ;;  %v1209_v29 = vunpack.i.l.bf16 %v1208_v40  ;;  %v456_v13 = vsub.s32 5, %v435_v57 }
  0xb5   :  { %v151_v47 = vsel %vm145_vm4, %v144_v26, %v1587_v45  ;;  %1055 = vmatprep.subr.bf16.mxu0 %v1054_v43  ;;  %1043 = vmatprep.subr.bf16.mxu1 %v1042_v19  ;;  %v146_v7 = vsel %vm145_vm4, %v1205_v2, %v144_v26  ;;  %v1758_v61 = vrot.slane %v48_v25, %v440_v58  ;;  %v448_v2 = vsub.s32 3, %v435_v57 }
  0xb6   :  { %v1058_v28 = vpack.c.bf16 %v151_v47, %v1447_v1  ;;  %1045 = vmatpush1.bf16.msra.mxu1 %v1044_v24  ;;  %v166_v36 = vsel %vm164_vm6, %v1209_v29, %v1210_v27  ;;  %v1060_v45 = vpack.c.bf16 %v146_v7, %v1486_v8  ;;  %v167_v39 = vsel %vm164_vm6, %v1175_v59, %v1209_v29 }
  0xb7   :  { %v163_v0 = vpop.permute.xlu1 %162  ;;  %v1762_v14 = vrot.slane %v48_v25, %v444_v63  ;;  %v1764_v20 = vrot.slane %v48_v25, %v448_v2 }
  0xb8   :  { %v1213_v31 = vpop.permute.xlu0 %1212  ;;  %1057 = vmatpush1.bf16.msra.mxu0 %v1056_v49  ;;  %v165_v8 = vsel %vm164_vm6, %v1210_v27, %v163_v0  ;;  %v170_v22 = vsel %vm164_vm6, %v163_v0, %v1630_v3  ;;  %v1769_v27 = vrot.slane %v48_v25, %v456_v13 }
  0xb9   :  { %v1215_v33 = vunpack.i.h.bf16 %v1213_v31  ;;  %v1214_v34 = vunpack.i.l.bf16 %v1213_v31  ;;  %1059 = vmatprep.subr.bf16.mxu0 %v1058_v28 }
  0xbb   :  { %v197_v37 = vpop.permute.xlu1 %196  ;;  %v185_v1 = vsel %vm183_vm5, %v1214_v34, %v1215_v33  ;;  %v186_v42 = vsel %vm183_vm5, %v1180_v54, %v1214_v34 }
  0xbc   :  { %v182_v44 = vpop.permute.xlu0 %181  ;;  %1061 = vmatpush1.bf16.msra.mxu0 %v1060_v45  ;;  %v1046_v46 = vpack.c.bf16 %v185_v1, %v166_v36  ;;  %v1048_v48 = vpack.c.bf16 %v186_v42, %v167_v39 }
  0xbd   :  { %v184_v56 = vsel %vm183_vm5, %v1215_v33, %v182_v44  ;;  %v189_v51 = vsel %vm183_vm5, %v182_v44, %v1621_v62  ;;  %v205_v62 = vsel %vm202_vm7, %v1662_v18, %v197_v37  ;;  %v436_v18 = vsub.s32 0, %v435_v57 }
  0xbe   :  { %v1062_v59 = vpack.c.bf16 %v189_v51, %v170_v22  ;;  %v1064_v54 = vpack.c.bf16 %v184_v56, %v165_v8  ;;  %1047 = vmatprep.subr.bf16.mxu1 %v1046_v46  ;;  %v520_v8 = vld [vmem:[%s2118_s5] sm:$0xff] }
  0xbf   :  { %1049 = vmatpush1.bf16.msra.mxu1 %v1048_v48  ;;  %v201_v23 = vpop.permute.xlu1 %200  ;;  %v1756_v60 = vrot.slane %v48_v25, %v436_v18  ;;  %v508_v48 = vld [vmem:[%s2117_s4] sm:$0xff] }
  0xc0   :  { %v199_v50 = vpop.permute.xlu0 %198  ;;  %1063 = vmatprep.subr.bf16.mxu0 %v1062_v59  ;;  %v208_v15 = vsel %vm202_vm7, %v201_v23, %v191_v5 }
  0xc1   :  { %1065 = vmatpush1.bf16.msra.mxu0 %v1064_v54  ;;  %v204_v3 = vsel %vm202_vm7, %v197_v37, %v199_v50  ;;  %v203_v52 = vsel %vm202_vm7, %v199_v50, %v201_v23 }
  0xc2   :  { %307 = vmatprep.subr.mxu1 %v204_v3  ;;  %378 = vmatprep.subr.mxu0 %v208_v15 }
  0xc3   :  { %308 = vmatpush1.msra.mxu1 %v205_v62 }
  0xc4   :  { %1013 = vmatmul.mubr.msk.f32.vlgmr.msra.gmra.mrb[0].mxu1 %vm216_vm8, %v1684_v6 }
  0xc5   :  { %379 = vmatpush1.msra.mxu0 %v203_v52  ;;  %762 = vmatprep.mubr.f32.mxu1 %v1368_v10 }
  0xc6   :  { %1014 = vmatmul.mubr.msk.f32.vlgmr.msra.gmra.mrb[2].mxu0 %vm216_vm8, %v1684_v6  ;;  %v452_v6 = vsub.s32 4, %v435_v57 }
  0xc7   :  { %833 = vmatprep.mubr.f32.mxu0 %v1368_v10 }
  0xc8   :  { %v1766_v41 = vrot.slane %v48_v25, %v452_v6 }
  0xd1   :  { %v214_v32 = vpop.permute.xlu0 %213 }
 0x186   :  { %v286_v53 = vpop.f32.mrb[0].mxu0 }
 0x187   :  { %v288_v55 = vpop.f32.mrb[1].mxu0  ;;  %v287_v35 = vadd.f32 %v286_v53, %v214_v32 }
 0x188   :  { %v289_v30 = vadd.f32 %v288_v55, %v214_v32 }
 0x189   :  { %v464_v4 = vmul.f32 %v1756_v60, %v287_v35 }
 0x18a   :  { %v465_v5 = vmul.f32 %v1758_v61, %v289_v30 }
 0x18b   :  { %v477_v21 = vmul.f32 %v464_v4, %v464_v4 }
 0x18c   :  { %v478_v9 = vmul.f32 %v465_v5, %v465_v5  ;;  %v470_v43 = vadd.f32 %v465_v5, %v464_v4 }
 0x18e   :  { %v483_v28 = vadd.f32 %v478_v9, %v477_v21 }
 0x197   :  { %v357_v17 = vpop.f32.mrb[0].mxu1 }
 0x198   :  { %v358_v11 = vadd.f32 %v357_v17, %v214_v32  ;;  %v359_v12 = vpop.f32.mrb[1].mxu1 }
 0x199   :  { %v360_v38 = vadd.f32 %v359_v12, %v214_v32  ;;  %v428_v40 = vpop.f32.mrb[2].mxu0 }
 0x19a   :  { %v466_v19 = vmul.f32 %v1762_v14, %v358_v11  ;;  %v429_v24 = vadd.f32 %v428_v40, %v214_v32  ;;  %v430_v26 = vpop.f32.mrb[3].mxu0 }
 0x19b   :  { %v1772_v47 = vmul.f32 %v1764_v20, %v360_v38  ;;  %v431_v49 = vadd.f32 %v430_v26, %v214_v32 }
 0x19c   :  { %v471_v29 = vadd.f32 %v470_v43, %v466_v19  ;;  %v479_v7 = vmul.f32 %v466_v19, %v466_v19  ;;  %v468_v0 = vmul.f32 %v1766_v41, %v429_v24 }
 0x19d   :  { %v480_v31 = vmul.f32 %v1772_v47, %v1772_v47  ;;  %v469_v33 = vmul.f32 %v1769_v27, %v431_v49 }
 0x19e   :  { %v472_v34 = vadd.f32 %v471_v29, %v1772_v47  ;;  %v484_v36 = vadd.f32 %v483_v28, %v479_v7  ;;  %v481_v37 = vmul.f32 %v468_v0, %v468_v0 }
 0x19f   :  { %v482_v42 = vmul.f32 %v469_v33, %v469_v33 }
 0x1a0   :  { %v473_v45 = vadd.f32 %v472_v34, %v468_v0  ;;  %v485_v1 = vadd.f32 %v484_v36, %v480_v31 }
 0x1a2   :  { %v474_v39 = vadd.f32 %v473_v45, %v469_v33  ;;  %v486_v44 = vadd.f32 %v485_v1, %v481_v37 }
 0x1a4   :  { %475 = vadd.xlane.f32.xlu1 %v474_v39  ;;  %v487_v46 = vadd.f32 %v486_v44, %v482_v42  ;;  %v689_v39 = vld [vmem:[%s2120_s7] sm:$0xff] }
 0x1a6   :  { %488 = vadd.xlane.f32.xlu0 %v487_v46 }
 0x1b5   :  { %511 = vperm.xlu1 %1217, %v508_v48  }
 0x1bc   :  { %523 = vperm.xlu0 %1216, %v520_v8  }
 0x231   :  { %v476_v22 = vpop.xlane.xlu1 %475 }
 0x232   :  { %v490_v56 = vmul.f32 0.001953125, %v476_v22 }
 0x233   :  { %v489_v51 = vpop.xlane.xlu0 %488 }
 0x234   :  { %v491_v59 = vmul.f32 0.001953125, %v489_v51  ;;  %v492_v54 = vmul.f32 %v490_v56, %v490_v56  ;;  %v494_v15 = vsub.f32 %v464_v4, %v490_v56  ;;  %v495_v3 = vsub.f32 %v465_v5, %v490_v56 }
 0x235   :  { %v496_v62 = vsub.f32 %v466_v19, %v490_v56  ;;  %v499_v53 = vsub.f32 %v469_v33, %v490_v56  ;;  %v512_v55 = vpop.permute.xlu1 %511  ;;  %v497_v26 = vsub.f32 %v1772_v47, %v490_v56  ;;  %v498_v49 = vsub.f32 %v468_v0, %v490_v56 }
 0x236   :  { %v493_v23 = vsub.f32 %v491_v59, %v492_v54 }
 0x238   :  { %v500_v50 = vadd.f32 1e-05, %v493_v23 }
 0x23a   :  { %1308 = vrsqrt.f32 %v500_v50 }
 0x23b   :  { %v524_v63 = vpop.permute.xlu0 %523 }
 0x244   :  { %v1309_v52 = vpop.eup %1308 }
 0x245   :  { %v502_v57 = vmul.f32 %v1309_v52, %v494_v15  ;;  %v503_v18 = vmul.f32 %v1309_v52, %v495_v3  ;;  %v504_v58 = vmul.f32 %v1309_v52, %v496_v62  ;;  %v507_v32 = vmul.f32 %v1309_v52, %v499_v53 }
 0x246   :  { %v505_v28 = vmul.f32 %v1309_v52, %v497_v26  ;;  %v506_v29 = vmul.f32 %v1309_v52, %v498_v49 }
 0x247   :  { %v514_v25 = vmul.f32 %v512_v55, %v502_v57  ;;  %v515_v35 = vmul.f32 %v512_v55, %v503_v18  ;;  %v516_v30 = vmul.f32 %v512_v55, %v504_v58  ;;  %v519_v2 = vmul.f32 %v512_v55, %v507_v32 }
 0x248   :  { %v517_v7 = vmul.f32 %v512_v55, %v505_v28  ;;  %v518_v31 = vmul.f32 %v512_v55, %v506_v29 }
 0x249   :  { %v526_v6 = vadd.f32 %v524_v63, %v514_v25  ;;  %v527_v13 = vadd.f32 %v524_v63, %v515_v35  ;;  %v528_v17 = vadd.f32 %v524_v63, %v516_v30  ;;  %v531_v21 = vadd.f32 %v524_v63, %v519_v2 }
 0x24a   :  { %v529_v33 = vadd.f32 %v524_v63, %v517_v7  ;;  %v530_v34 = vadd.f32 %v524_v63, %v518_v31 }
 0x24b   :  { %v532_v9 = vmax.f32 %v526_v6, 0.0  ;;  %v533_v4 = vmax.f32 %v527_v13, 0.0  ;;  %v534_v5 = vmax.f32 %v528_v17, 0.0  ;;  %v537_v11 = vmax.f32 %v531_v21, 0.0 }
 0x24c   :  { %v535_v0 = vmax.f32 %v529_v33, 0.0  ;;  %v536_v36 = vmax.f32 %v530_v34, 0.0 }
 0x24d   :  { %v1786_v12 = vmul.f32 %v532_v9, %v1756_v60  ;;  %v1789_v38 = vmul.f32 %v533_v4, %v1758_v61  ;;  %v1792_v40 = vmul.f32 %v534_v5, %v1762_v14  ;;  %v1795_v43 = vmul.f32 %v537_v11, %v1769_v27 }
 0x24e   :  { %v1815_v45 = vmul.f32 %v535_v0, %v1764_v20  ;;  %v1818_v37 = vmul.f32 %v536_v36, %v1766_v41 }
 0x24f   :  { %v1218_v19 = vpack.i.bf16 %v1789_v38, %v1786_v12  ;;  %v1228_v24 = vpack.i.bf16 %v1792_v40, %v1795_v43  ;;  %v1258_v47 = vpack.i.bf16 %v1792_v40, %v1789_v38 }
 0x250   :  { %v1273_v1 = vpack.i.bf16 %v1818_v37, %v1815_v45 }
 0x251   :  { %1219 = vrot.lane.b32.xlu1 %v1218_v19, %s1361_s12  ;;  %1229 = vrot.lane.b32.xlu0 %v1228_v24, %s1361_s12 }
 0x255   :  { %1224 = vrot.lane.b32.xlu1 %v1218_v19, %s1362_s13  ;;  %1239 = vrot.lane.b32.xlu0 %v1218_v19, %s1364_s15 }
 0x259   :  { %1234 = vrot.lane.b32.xlu1 %v1228_v24, %s1362_s13  ;;  %1249 = vrot.lane.b32.xlu0 %v1228_v24, %s1364_s15 }
 0x25d   :  { %1244 = vrot.lane.b32.xlu1 %v1218_v19, %s1363_s14  ;;  %1259 = vrot.lane.b32.xlu0 %v1258_v47, %s1365_s16 }
 0x261   :  { %1254 = vrot.lane.b32.xlu1 %v1228_v24, %s1363_s14  ;;  %1264 = vrot.lane.b32.xlu0 %v1258_v47, %s1367_s18 }
 0x265   :  { %616 = vrot.lane.b32.xlu1 %v1786_v12, %s1365_s16  ;;  %634 = vrot.lane.b32.xlu0 %v1786_v12, %s1367_s18 }
 0x269   :  { %1269 = vrot.lane.b32.xlu1 %v1258_v47, %s1366_s17  ;;  %1274 = vrot.lane.b32.xlu0 %v1273_v1, %s1361_s12 }
 0x26d   :  { %652 = vrot.lane.b32.xlu1 %v1786_v12, %s1366_s17  ;;  %1284 = vrot.lane.b32.xlu0 %v1273_v1, %s1364_s15 }
 0x271   :  { %1279 = vrot.lane.b32.xlu1 %v1273_v1, %s1362_s13  ;;  %672 = vrot.lane.b32.xlu0 %v1789_v38, %s1369_s0 }
 0x275   :  { %1289 = vrot.lane.b32.xlu1 %v1273_v1, %s1363_s14  ;;  %670 = vrot.lane.b32.xlu0 %v1786_v12, %s1369_s0 }
 0x279   :  { %674 = vrot.lane.b32.xlu1 %v1792_v40, %s1369_s0  ;;  %626 = vrot.lane.b32.xlu0 %v1795_v43, %s1365_s16 }
 0x27d   :  { %1294 = vrot.lane.b32.xlu1 %v1273_v1, %s1365_s16  ;;  %1304 = vrot.lane.b32.xlu0 %v1273_v1, %s1366_s17 }
 0x281   :  { %1299 = vrot.lane.b32.xlu1 %v1273_v1, %s1367_s18  ;;  %662 = vrot.lane.b32.xlu0 %v1795_v43, %s1366_s17 }
 0x285   :  { %644 = vrot.lane.b32.xlu1 %v1795_v43, %s1367_s18  ;;  %678 = vrot.lane.b32.xlu0 %v1818_v37, %s1369_s0 }
 0x289   :  { %676 = vrot.lane.b32.xlu1 %v1815_v45, %s1369_s0  ;;  %692 = vperm.xlu0 %1216, %v689_v39  }
 0x28d   :  { %680 = vrot.lane.b32.xlu1 %v1795_v43, %s1369_s0 }
 0x2c3   :  { %v1857_v42 = vpop.permute.xlu1 %1219  ;;  %v1859_v44 = vpop.permute.xlu0 %1229 }
 0x2c4   :  { %v1222_v46 = vunpack.i.h.bf16 %v1857_v42  ;;  %v1221_v48 = vunpack.i.l.bf16 %v1857_v42  ;;  %v1231_v59 = vunpack.i.l.bf16 %v1859_v44 }
 0x2c6   :  { %v560_v54 = vsel %vm69_vm0, %v1221_v48, %v1222_v46  ;;  %v561_v52 = vsel %vm69_vm0, %v1231_v59, %v1221_v48 }
 0x2c7   :  { %v1863_v8 = vpop.permute.xlu1 %1224  ;;  %v1865_v22 = vpop.permute.xlu0 %1239 }
 0x2c8   :  { %v1227_v56 = vunpack.i.h.bf16 %v1863_v8  ;;  %v1226_v51 = vunpack.i.l.bf16 %v1863_v8  ;;  %v1242_v53 = vunpack.i.h.bf16 %v1865_v22  ;;  %v1241_v55 = vunpack.i.l.bf16 %v1865_v22 }
 0x2ca   :  { %v578_v23 = vsel %vm88_vm1, %v1226_v51, %v1227_v56  ;;  %v596_v6 = vsel %vm107_vm2, %v1241_v55, %v1242_v53 }
 0x2cb   :  { %v1878_v50 = vpop.permute.xlu1 %1234  ;;  %v1066_v15 = vpack.c.bf16 %v578_v23, %v560_v54  ;;  %v1880_v3 = vpop.permute.xlu0 %1249 }
 0x2cc   :  { %v1236_v62 = vunpack.i.l.bf16 %v1878_v50  ;;  %v1251_v2 = vunpack.i.l.bf16 %v1880_v3  ;;  %v1237_v23 = vunpack.i.h.bf16 %v1878_v50  ;;  %v1252_v8 = vunpack.i.h.bf16 %v1880_v3 }
 0x2cd   :  { %1067 = vmatprep.subr.bf16.mxu1 %v1066_v15 }
 0x2ce   :  { %v579_v57 = vsel %vm88_vm1, %v1236_v62, %v1226_v51  ;;  %v597_v11 = vsel %vm107_vm2, %v1251_v2, %v1241_v55  ;;  %v1232_v55 = vunpack.i.h.bf16 %v1859_v44 }
 0x2cf   :  { %v1068_v18 = vpack.c.bf16 %v579_v57, %v561_v52  ;;  %v1893_v58 = vpop.permute.xlu1 %1244  ;;  %v1895_v32 = vpop.permute.xlu0 %1259 }
 0x2d0   :  { %v1247_v25 = vunpack.i.h.bf16 %v1893_v58  ;;  %v1246_v35 = vunpack.i.l.bf16 %v1893_v58  ;;  %v1262_v30 = vunpack.i.h.bf16 %v1895_v32  ;;  %v1261_v63 = vunpack.i.l.bf16 %v1895_v32 }
 0x2d1   :  { %1069 = vmatpush1.bf16.msra.mxu1 %v1068_v18  ;;  %v595_v58 = vsel %vm107_vm2, %v1242_v53, %v1252_v8 }
 0x2d2   :  { %v614_v13 = vsel %vm126_vm3, %v1246_v35, %v1247_v25  ;;  %v631_v5 = vsel %vm145_vm4, %v1261_v63, %v1262_v30 }
 0x2d3   :  { %v1910_v17 = vpop.permute.xlu1 %1254  ;;  %v1070_v21 = vpack.c.bf16 %v614_v13, %v596_v6  ;;  %v1912_v9 = vpop.permute.xlu0 %1264  ;;  %v1074_v29 = vpack.c.bf16 %v631_v5, %v1789_v38 }
 0x2d4   :  { %v1256_v4 = vunpack.i.l.bf16 %v1910_v17  ;;  %v1267_v7 = vunpack.i.h.bf16 %v1912_v9  ;;  %v1266_v31 = vunpack.i.l.bf16 %v1912_v9  ;;  %v1257_v6 = vunpack.i.h.bf16 %v1910_v17 }
 0x2d5   :  { %1071 = vmatprep.subr.bf16.mxu1 %v1070_v21 }
 0x2d6   :  { %v615_v19 = vsel %vm126_vm3, %v1256_v4, %v1246_v35  ;;  %v649_v38 = vsel %vm164_vm6, %v1266_v31, %v1267_v7 }
 0x2d7   :  { %v1072_v24 = vpack.c.bf16 %v615_v19, %v597_v11  ;;  %v1927_v26 = vpop.permute.xlu1 %616  ;;  %v1929_v49 = vpop.permute.xlu0 %634  ;;  %v559_v19 = vsel %vm69_vm0, %v1222_v46, %v1232_v55 }
 0x2d8   :  { %v632_v28 = vsel %vm145_vm4, %v1927_v26, %v1261_v63  ;;  %v650_v48 = vsel %vm164_vm6, %v1929_v49, %v1266_v31  ;;  %v577_v63 = vsel %vm88_vm1, %v1227_v56, %v1237_v23 }
 0x2d9   :  { %1073 = vmatpush1.bf16.msra.mxu1 %v1072_v24  ;;  %v1076_v33 = vpack.c.bf16 %v632_v28, %v1786_v12  ;;  %v1084_v28 = vpack.c.bf16 %v577_v63, %v559_v19 }
 0x2da   :  { %1075 = vmatprep.subr.bf16.mxu1 %v1074_v29 }
 0x2db   :  { %v1938_v34 = vpop.permute.xlu1 %1269  ;;  %v1275_v47 = vpop.permute.xlu0 %1274 }
 0x2dc   :  { %v1272_v0 = vunpack.i.h.bf16 %v1938_v34  ;;  %v1271_v36 = vunpack.i.l.bf16 %v1938_v34  ;;  %v1276_v52 = vunpack.i.l.bf16 %v1275_v47  ;;  %v1277_v29 = vunpack.i.h.bf16 %v1275_v47 }
 0x2dd   :  { %1077 = vmatpush1.bf16.msra.mxu1 %v1076_v33 }
 0x2de   :  { %v667_v1 = vsel %vm183_vm5, %v1271_v36, %v1272_v0  ;;  %v558_v5 = vsel %vm69_vm0, %v1232_v55, %v1276_v52  ;;  %v556_v22 = vsel %vm69_vm0, %v1277_v29, %v1231_v59 }
 0x2df   :  { %v1950_v39 = vpop.permute.xlu1 %652  ;;  %v1078_v12 = vpack.c.bf16 %v667_v1, %v649_v38  ;;  %v1955_v51 = vpop.permute.xlu0 %1284  ;;  %v613_v38 = vsel %vm126_vm3, %v1247_v25, %v1257_v6 }
 0x2e0   :  { %v668_v54 = vsel %vm183_vm5, %v1950_v39, %v1271_v36  ;;  %v1286_v13 = vunpack.i.l.bf16 %v1955_v51  ;;  %v1287_v42 = vunpack.i.h.bf16 %v1955_v51  ;;  %v1088_v51 = vpack.c.bf16 %v613_v38, %v595_v58 }
 0x2e1   :  { %v1080_v15 = vpack.c.bf16 %v668_v54, %v650_v48  ;;  %1079 = vmatprep.subr.bf16.mxu1 %v1078_v12 }
 0x2e2   :  { %v594_v46 = vsel %vm107_vm2, %v1252_v8, %v1286_v13  ;;  %v592_v44 = vsel %vm107_vm2, %v1287_v42, %v1251_v2  ;;  %v593_v3 = vsel %vm107_vm2, %v1286_v13, %v1287_v42 }
 0x2e3   :  { %v1280_v57 = vpop.permute.xlu1 %1279  ;;  %1081 = vmatpush1.bf16.msra.mxu1 %v1080_v15  ;;  %v673_v18 = vpop.permute.xlu0 %672 }
 0x2e4   :  { %v1281_v35 = vunpack.i.l.bf16 %v1280_v57  ;;  %v1282_v21 = vunpack.i.h.bf16 %v1280_v57 }
 0x2e6   :  { %v576_v11 = vsel %vm88_vm1, %v1237_v23, %v1281_v35  ;;  %v574_v47 = vsel %vm88_vm1, %v1282_v21, %v1236_v62  ;;  %v575_v25 = vsel %vm88_vm1, %v1281_v35, %v1282_v21  ;;  %v2006_v62 = vld [vmem:[%s2119_s6] sm:$0xff]  ;;  %v557_v23 = vsel %vm69_vm0, %v1276_v52, %v1277_v29 }
 0x2e7   :  { %v1290_v24 = vpop.permute.xlu1 %1289  ;;  %v1082_v56 = vpack.c.bf16 %v576_v11, %v558_v5  ;;  %v1977_v31 = vpop.permute.xlu0 %670  ;;  %v1098_v55 = vpack.c.bf16 %v574_v47, %v556_v22  ;;  %v1100_v57 = vpack.c.bf16 %v575_v25, %v557_v23 }
 0x2e8   :  { %v1292_v33 = vunpack.i.h.bf16 %v1290_v24  ;;  %v1291_v36 = vunpack.i.l.bf16 %v1290_v24  ;;  %v686_v15 = vsel %vm202_vm7, %v1977_v31, %v673_v18 }
 0x2e9   :  { %1083 = vmatprep.subr.bf16.mxu0 %v1082_v56 }
 0x2ea   :  { %1085 = vmatpush1.bf16.msra.mxu0 %v1084_v28  ;;  %v612_v1 = vsel %vm126_vm3, %v1257_v6, %v1291_v36  ;;  %v610_v53 = vsel %vm126_vm3, %v1292_v33, %v1256_v4  ;;  %v611_v59 = vsel %vm126_vm3, %v1291_v36, %v1292_v33 }
 0x2eb   :  { %v1998_v12 = vpop.permute.xlu1 %674  ;;  %v1086_v48 = vpack.c.bf16 %v612_v1, %v594_v46  ;;  %v627_v54 = vpop.permute.xlu0 %626  ;;  %v1102_v4 = vpack.c.bf16 %v610_v53, %v592_v44  ;;  %v1104_v6 = vpack.c.bf16 %v611_v59, %v593_v3 }
 0x2ec   :  { %v685_v50 = vsel %vm202_vm7, %v673_v18, %v1998_v12  ;;  %v633_v52 = vsel %vm145_vm4, %v627_v54, %v1927_v26 }
 0x2ed   :  { %714 = vmatprep.subr.mxu1 %v685_v50  ;;  %1087 = vmatprep.subr.bf16.mxu0 %v1086_v48  ;;  %v1106_v11 = vpack.c.bf16 %v633_v52, %v1795_v43 }
 0x2ee   :  { %715 = vmatpush1.msra.mxu1 %v686_v15  ;;  %1089 = vmatpush1.bf16.msra.mxu0 %v1088_v51 }
 0x2ef   :  { %v1295_v17 = vpop.permute.xlu1 %1294  ;;  %1015 = vmatmul.mubr.msk.f32.vlgmr.msra.gmra.mrb[2].mxu1 %vm216_vm8, %v2006_v62  ;;  %1099 = vmatprep.subr.bf16.mxu1 %v1098_v55  ;;  %v1305_v18 = vpop.permute.xlu0 %1304 }
 0x2f0   :  { %v1297_v35 = vunpack.i.h.bf16 %v1295_v17  ;;  %v1296_v63 = vunpack.i.l.bf16 %v1295_v17  ;;  %1101 = vmatpush1.bf16.msra.mxu1 %v1100_v57  ;;  %904 = vmatprep.mubr.f32.mxu1 %v1368_v10  ;;  %v1306_v2 = vunpack.i.l.bf16 %v1305_v18  ;;  %v1307_v21 = vunpack.i.h.bf16 %v1305_v18 }
 0x2f1   :  { %1103 = vmatprep.subr.bf16.mxu1 %v1102_v4 }
 0x2f2   :  { %v630_v5 = vsel %vm145_vm4, %v1262_v30, %v1296_v63  ;;  %v629_v26 = vsel %vm145_vm4, %v1296_v63, %v1297_v35  ;;  %v628_v10 = vsel %vm145_vm4, %v1297_v35, %v627_v54  ;;  %v666_v32 = vsel %vm183_vm5, %v1272_v0, %v1306_v2 }
 0x2f3   :  { %v1092_v19 = vpack.c.bf16 %v630_v5, %v1792_v40  ;;  %v1300_v13 = vpop.permute.xlu1 %1299  ;;  %v1090_v8 = vpack.c.bf16 %v629_v26, %v1815_v45  ;;  %v663_v30 = vpop.permute.xlu0 %662  ;;  %v1108_v43 = vpack.c.bf16 %v628_v10, %v1818_v37  ;;  %v665_v34 = vsel %vm183_vm5, %v1306_v2, %v1307_v21 }
 0x2f4   :  { %v1302_v24 = vunpack.i.h.bf16 %v1300_v13  ;;  %v1301_v56 = vunpack.i.l.bf16 %v1300_v13  ;;  %1105 = vmatpush1.bf16.msra.mxu1 %v1104_v6  ;;  %v664_v33 = vsel %vm183_vm5, %v1307_v21, %v663_v30  ;;  %v669_v37 = vsel %vm183_vm5, %v663_v30, %v1950_v39 }
 0x2f5   :  { %1091 = vmatprep.subr.bf16.mxu0 %v1090_v8  ;;  %1107 = vmatprep.subr.bf16.mxu1 %v1106_v11 }
 0x2f6   :  { %v648_v40 = vsel %vm164_vm6, %v1267_v7, %v1301_v56  ;;  %1093 = vmatpush1.bf16.msra.mxu0 %v1092_v19  ;;  %v647_v45 = vsel %vm164_vm6, %v1301_v56, %v1302_v24  ;;  %v967_v56 = vld [vmem:[%s2122_s9] sm:$0xff] }
 0x2f7   :  { %v1096_v28 = vpack.c.bf16 %v666_v32, %v648_v40  ;;  %v645_v29 = vpop.permute.xlu1 %644  ;;  %v1094_v0 = vpack.c.bf16 %v665_v34, %v647_v45  ;;  %v679_v42 = vpop.permute.xlu0 %678  ;;  %v955_v32 = vld [vmem:[%s2121_s8] sm:$0xff]  ;;  %s1371_s8 = smov [#allocation5]  }
 0x2f8   :  { %v646_v9 = vsel %vm164_vm6, %v1302_v24, %v645_v29  ;;  %v651_v7 = vsel %vm164_vm6, %v645_v29, %v1929_v49  ;;  %1109 = vmatpush1.bf16.msra.mxu1 %v1108_v43  ;;  %s1003_s9 = sshll.u32 %s1371_s8, 4  ;;  %s1004_s9 = int_to_ptr.vmem [resolvable:$true] %s1003_s9 }
 0x2f9   :  { %v1110_v36 = vpack.c.bf16 %v669_v37, %v651_v7  ;;  %v1112_v38 = vpack.c.bf16 %v664_v33, %v646_v9  ;;  %1095 = vmatprep.subr.bf16.mxu0 %v1094_v0  ;;  %s1334_s12 = scalar_lea.vmem %s1004_s9, 768  ;;  %p1339_p9 = scmp.lt.s32.totalorder %s1004_s9, %s1004_s9 }
 0x2fa   :  { %1097 = vmatpush1.bf16.msra.mxu0 %v1096_v28  ;;  %p1335_p8 = scmp.ne.s32.totalorder %s1004_s9, %s1334_s12  ;;  %p1340_p10 = scmp.lt.s32.totalorder %s1334_s12, %s1334_s12 }
 0x2fb   :  { %v677_v46 = vpop.permute.xlu1 %676  ;;  %1111 = vmatprep.subr.bf16.mxu1 %v1110_v36 }
 0x2fc   :  { %v684_v1 = vsel %vm202_vm7, %v1998_v12, %v677_v46  ;;  %1113 = vmatpush1.bf16.msra.mxu1 %v1112_v38  ;;  %v683_v39 = vsel %vm202_vm7, %v677_v46, %v679_v42  ;;  %p1341_p11 = por %p1340_p10, %p1339_p9 }
 0x2fd   :  { %785 = vmatprep.subr.mxu0 %v683_v39 }
 0x2fe   :  { %786 = vmatpush1.msra.mxu0 %v684_v1  ;;  %p1342_p12 = pnand %p1341_p11, %p1335_p8 }
 0x2ff   :  { %v681_v47 = vpop.permute.xlu1 %680  ;;  %1016 = vmatmul.mubr.msk.f32.vlgmr.msra.gmra.mrb[4].mxu0 %vm216_vm8, %v2006_v62 }
 0x300   :  { %v682_v49 = vsel %vm202_vm7, %v679_v42, %v681_v47  ;;  %v687_v58 = vsel %vm202_vm7, %v681_v47, %v1977_v31 }
 0x301   :  { %856 = vmatprep.subr.mxu1 %v687_v58 }
 0x302   :  { %857 = vmatpush1.msra.mxu1 %v682_v49 }
 0x303   :  { %1017 = vmatmul.mubr.msk.f32.vlgmr.msra.gmra.mrb[4].mxu1 %vm216_vm8, %v2006_v62 }
 0x308   :  { %v693_v48 = vpop.permute.xlu0 %692 }
 0x3c2   :  { %v764_v25 = vpop.f32.mrb[2].mxu1 }
 0x3c3   :  { %v766_v12 = vpop.f32.mrb[3].mxu1  ;;  %v765_v51 = vadd.f32 %v764_v25, %v693_v48 }
 0x3c4   :  { %v767_v54 = vadd.f32 %v766_v12, %v693_v48 }
 0x3c5   :  { %v911_v50 = vmul.f32 %v765_v51, %v1756_v60 }
 0x3c6   :  { %v912_v22 = vmul.f32 %v767_v54, %v1758_v61 }
 0x3c7   :  { %v924_v23 = vmul.f32 %v911_v50, %v911_v50 }
 0x3c8   :  { %v925_v15 = vmul.f32 %v912_v22, %v912_v22  ;;  %v917_v57 = vadd.f32 %v912_v22, %v911_v50 }
 0x3ca   :  { %v930_v17 = vadd.f32 %v925_v15, %v924_v23 }
 0x3d2   :  { %v835_v53 = vpop.f32.mrb[4].mxu0 }
 0x3d3   :  { %v836_v55 = vadd.f32 %v835_v53, %v693_v48  ;;  %v837_v16 = vpop.f32.mrb[5].mxu0 }
 0x3d4   :  { %v838_v31 = vadd.f32 %v837_v16, %v693_v48 }
 0x3d5   :  { %v913_v44 = vmul.f32 %v836_v55, %v1762_v14 }
 0x3d6   :  { %v914_v62 = vmul.f32 %v838_v31, %v1764_v20  ;;  %v906_v59 = vpop.f32.mrb[4].mxu1 }
 0x3d7   :  { %v918_v4 = vadd.f32 %v917_v57, %v913_v44  ;;  %v926_v52 = vmul.f32 %v913_v44, %v913_v44  ;;  %v907_v18 = vadd.f32 %v906_v59, %v693_v48  ;;  %v908_v35 = vpop.f32.mrb[5].mxu1 }
 0x3d8   :  { %v927_v63 = vmul.f32 %v914_v62, %v914_v62  ;;  %v909_v3 = vadd.f32 %v908_v35, %v693_v48 }
 0x3d9   :  { %v915_v2 = vmul.f32 %v907_v18, %v1766_v41  ;;  %v919_v6 = vadd.f32 %v918_v4, %v914_v62  ;;  %v931_v21 = vadd.f32 %v930_v17, %v926_v52 }
 0x3da   :  { %v916_v5 = vmul.f32 %v909_v3, %v1769_v27 }
 0x3db   :  { %v920_v26 = vadd.f32 %v919_v6, %v915_v2  ;;  %v928_v11 = vmul.f32 %v915_v2, %v915_v2  ;;  %v932_v10 = vadd.f32 %v931_v21, %v927_v63 }
 0x3dc   :  { %v929_v19 = vmul.f32 %v916_v5, %v916_v5 }
 0x3dd   :  { %v921_v13 = vadd.f32 %v920_v26, %v916_v5  ;;  %v933_v8 = vadd.f32 %v932_v10, %v928_v11 }
 0x3df   :  { %922 = vadd.xlane.f32.xlu1 %v921_v13  ;;  %v934_v24 = vadd.f32 %v933_v8, %v929_v19 }
 0x3e1   :  { %935 = vadd.xlane.f32.xlu0 %v934_v24 }
 0x3f0   :  { %970 = vperm.xlu1 %1217, %v967_v56  }
 0x3f7   :  { %958 = vperm.xlu0 %1216, %v955_v32  }
 0x46c   :  { %v923_v30 = vpop.xlane.xlu1 %922 }
 0x46d   :  { %v937_v43 = vmul.f32 0.001953125, %v923_v30 }
 0x46e   :  { %v936_v40 = vpop.xlane.xlu0 %935 }
 0x46f   :  { %v938_v45 = vmul.f32 0.001953125, %v936_v40  ;;  %v939_v34 = vmul.f32 %v937_v43, %v937_v43  ;;  %v941_v0 = vsub.f32 %v911_v50, %v937_v43  ;;  %v942_v33 = vsub.f32 %v912_v22, %v937_v43 }
 0x470   :  { %v943_v37 = vsub.f32 %v913_v44, %v937_v43  ;;  %v944_v9 = vsub.f32 %v914_v62, %v937_v43  ;;  %v945_v36 = vsub.f32 %v915_v2, %v937_v43  ;;  %v946_v38 = vsub.f32 %v916_v5, %v937_v43  ;;  %v971_v54 = vpop.permute.xlu1 %970 }
 0x471   :  { %v940_v28 = vsub.f32 %v938_v45, %v939_v34 }
 0x473   :  { %v947_v29 = vadd.f32 1e-05, %v940_v28 }
 0x475   :  { %1310 = vrsqrt.f32 %v947_v29 }
 0x476   :  { %v959_v47 = vpop.permute.xlu0 %958 }
 0x47f   :  { %v1311_v7 = vpop.eup %1310 }
 0x480   :  { %v949_v42 = vmul.f32 %v1311_v7, %v941_v0  ;;  %v950_v46 = vmul.f32 %v1311_v7, %v942_v33  ;;  %v951_v1 = vmul.f32 %v1311_v7, %v943_v37  ;;  %v952_v39 = vmul.f32 %v1311_v7, %v944_v9 }
 0x481   :  { %v953_v49 = vmul.f32 %v1311_v7, %v945_v36  ;;  %v954_v58 = vmul.f32 %v1311_v7, %v946_v38 }
 0x482   :  { %v961_v25 = vmul.f32 %v959_v47, %v949_v42  ;;  %v962_v12 = vmul.f32 %v959_v47, %v950_v46  ;;  %v963_v48 = vmul.f32 %v959_v47, %v951_v1  ;;  %v964_v51 = vmul.f32 %v959_v47, %v952_v39 }
 0x483   :  { %v965_v53 = vmul.f32 %v959_v47, %v953_v49  ;;  %v966_v50 = vmul.f32 %v959_v47, %v954_v58 }
 0x484   :  { %v973_v22 = vadd.f32 %v971_v54, %v961_v25  ;;  %v974_v23 = vadd.f32 %v971_v54, %v962_v12  ;;  %v975_v15 = vadd.f32 %v971_v54, %v963_v48  ;;  %v976_v55 = vadd.f32 %v971_v54, %v964_v51 }
 0x485   :  { %v977_v16 = vadd.f32 %v971_v54, %v965_v53  ;;  %v978_v31 = vadd.f32 %v971_v54, %v966_v50 }
 0x486   :  { %v979_v57 = vmax.f32 %v973_v22, 0.0  ;;  %v980_v44 = vmax.f32 %v974_v23, 0.0  ;;  %v981_v62 = vmax.f32 %v975_v15, 0.0  ;;  %v982_v59 = vmax.f32 %v976_v55, 0.0 }
 0x487   :  { %v983_v17 = vmax.f32 %v977_v16, 0.0  ;;  %v984_v4 = vmax.f32 %v978_v31, 0.0 }
 0x488   :  { %v985_v52 = vmul.f32 %v979_v57, %v1756_v60  ;;  %v986_v18 = vmul.f32 %v980_v44, %v1758_v61  ;;  %v987_v35 = vmul.f32 %v981_v62, %v1762_v14  ;;  %v988_v63 = vmul.f32 %v982_v59, %v1764_v20 }
 0x489   :  { %v989_v3 = vmul.f32 %v983_v17, %v1766_v41  ;;  %v990_v2 = vmul.f32 %v984_v4, %v1769_v27 }
 0x48a   :  { %991 = vst [vmem:[#allocation5] sm:$0xff] %v985_v52  ;;  %992 = vst [vmem:[#allocation5 + $0x8] sm:$0xff] %v986_v18 }
 0x48b   :  { %993 = vst [vmem:[#allocation5 + $0x10] sm:$0xff] %v987_v35  ;;  %994 = vst [vmem:[#allocation5 + $0x18] sm:$0xff] %v988_v63 }
 0x48c   :  { %995 = vst [vmem:[#allocation5 + $0x20] sm:$0xff] %v989_v3  ;;  %996 = vst [vmem:[#allocation5 + $0x28] sm:$0xff] %v990_v2 }
 0x48d   :  { %1345 = shalt.err (!%p1342_p12)
}
 0x48e   :  { %s1346_s15 = scalar_lea.hbm %s2123_s10, 768 }
 0x48f   :  { %p1347_p13 = scmp.ne.s32.totalorder %s2123_s10, %s1346_s15  ;;  %p1350_p0 = scmp.lt.u32.totalorder %s1346_s15, %s2123_s10 }
 0x491   :  { %p1352_p1 = pnand %p1350_p0, %p1347_p13 }
 0x493   :  { %1355 = shalt.err (!%p1352_p1)
}
 0x494   :  { %1006 = dma.vmem_to_hbm [thread:$0]  %s1004_s9, 768, %s2123_s10, [#allocation4]  }
 0x495   :  { %1358 = dma.done.wait [#allocation4], 768  }
 0x496   :  { %1359 = vsyncadd [#allocation4], 4294966528 }
 0x497   :  { %1010 = vsyncpa [#allocation3], 1 }
 0x498   :  { %1011 = vsyncpa [#allocation4], 1 }

</bundles_post_ra>
